<compile_context>
chip_gen: v6e
topology: v6e:2x2x1
jax: 0.10.0
libtpu: 0.0.40
codegen_flags: <defaults>
</compile_context>

<pallas_src>
import functools

import jax
import jax.numpy as jnp
from jax.experimental import pallas as pl
from jax.experimental.pallas import tpu as pltpu

# deterministic "module parameters" (the ponderations): [MSE weight, L1 weight]
LIST_POND = (0.7, 0.3)

LANES = 128
SUBLANES = 8
MAX_TILE_ROWS = 8192  # (8192, 128) f32 block = 4 MiB per input per buffer


def _round_up(x, m):
    return ((x + m - 1) // m) * m


def _sublane_pack(dtype):
    """Sublane packing factor for a dtype (8 for 32-bit, 16 bf16, 32 int8)."""
    itemsize = jnp.dtype(dtype).itemsize
    return max(SUBLANES, (4 // max(1, itemsize)) * SUBLANES)


def _tensorcores_per_chip():
    """TensorCores addressable by one Pallas kernel on the local chip."""
    # TODO(synk): replace the device_kind sniff with pltpu.get_tpu_info() once
    # a stable core-count field is exposed there.
    try:
        kind = jax.devices()[0].device_kind.lower()
    except Exception:
        return 1
    if "v7" in kind:   # v7x: 2 TCs per chip
        return 2
    return 1           # v5e / v6e: single TC


def _loss_kernel(p_ref, t_ref, out_ref, acc_sq, acc_ab, *,
                 rows, tile_rows, tiles_per_split, n_elems,
                 w_mse, w_mae, needs_mask):
    c = pl.program_id(0)          # split (TensorCore shard) index
    i = pl.program_id(1)          # row-tile index inside the split

    @pl.when(i == 0)
    def _():
        acc_sq[...] = jnp.zeros_like(acc_sq)
        acc_ab[...] = jnp.zeros_like(acc_ab)

    r8 = tile_rows // SUBLANES

    def accumulate(d):
        # Fold the tile onto the (8,128) vector accumulators (VPU adds only).
        acc_sq[...] += jnp.sum((d * d).reshape(r8, SUBLANES, LANES), axis=0)
        acc_ab[...] += jnp.sum(jnp.abs(d).reshape(r8, SUBLANES, LANES), axis=0)

    if needs_mask:
        # Ragged tiling: gate the mask cost behind a scalar condition so only
        # the last (ragged) tile and any phantom tiles pay for it.
        logical_tile = c * tiles_per_split + i
        row0 = logical_tile * tile_rows
        full = row0 + tile_rows <= rows

        @pl.when(full)
        def _():
            accumulate(p_ref[...].astype(jnp.float32)
                       - t_ref[...].astype(jnp.float32))

        @pl.when(jnp.logical_not(full))
        def _():
            row_ids = row0 + jax.lax.broadcasted_iota(
                jnp.int32, (tile_rows, LANES), 0)
            valid = row_ids < rows
            d = p_ref[...].astype(jnp.float32) - t_ref[...].astype(jnp.float32)
            # Mask BEFORE squaring so OOB garbage (NaN/Inf) is zeroed.
            d = jnp.where(valid, d, jnp.float32(0.0))
            accumulate(d)
    else:
        # Exact tiling everywhere: pure streaming reduce, no mask compiled in.
        accumulate(p_ref[...].astype(jnp.float32)
                   - t_ref[...].astype(jnp.float32))

    # Final step of this split: one cross-lane reduce + weighted combine.
    @pl.when(i == pl.num_programs(1) - 1)
    def _():
        inv_n = 1.0 / float(n_elems)
        mse = jnp.sum(acc_sq[...]) * inv_n
        mae = jnp.sum(acc_ab[...]) * inv_n
        out_ref[0, 0] = jnp.float32(w_mse * mse + w_mae * mae)


def custom_loss(predict, target, list_pond=LIST_POND, *,
                max_tile_rows=MAX_TILE_ROWS, xla_fallback_elems=65536):
    """0.7 * MSE(predict, target) + 0.3 * L1(predict, target), fused on TPU."""
    assert predict.shape == target.shape
    n_elems = predict.size
    if n_elems == 0:
        return jnp.float32(0.0)
    # KB-scale inputs: pallas_call launch + pipeline warmup dwarfs the actual
    # HBM traffic; use the fused XLA reduction there.
    if n_elems <= xla_fallback_elems:
        return _reference(predict, target, list_pond)

    w_mse, w_mae = float(list_pond[0]), float(list_pond[1])

    # Flatten row-major in native dtype (free reshape; no f32 copy).
    p = predict.reshape(-1)
    t = target.reshape(-1)

    # Pad only when the element count is not lane-aligned.  Pads are identical
    # zeros on both inputs -> diff 0 -> no effect on either sum.
    rem = n_elems % LANES
    if rem:
        # TODO(synk): a 1-D tail epilogue would avoid this copy for very large
        # unaligned inputs; lane-aligned sizes (the common case) never pad.
        pad = LANES - rem
        p = jnp.pad(p, (0, pad))
        t = jnp.pad(t, (0, pad))

    rows = p.size // LANES
    pack = max(_sublane_pack(predict.dtype), _sublane_pack(target.dtype))

    # Degenerate tiny inputs: pad rows up to one sublane-pack so the block
    # never exceeds the array (pads are zeros on both sides -> contribute 0).
    if rows < pack:
        p = jnp.pad(p, (0, (pack - rows) * LANES))
        t = jnp.pad(t, (0, (pack - rows) * LANES))
        rows = pack

    p = p.reshape(rows, LANES)
    t = t.reshape(rows, LANES)

    # Largest sublane-pack-aligned tile that fits the budget and the array.
    tile_rows = min(max_tile_rows, (rows // pack) * pack)
    num_tiles = pl.cdiv(rows, tile_rows)

    # Shard the reduction across TensorCores only where that is real hardware
    # parallelism (v7x); on single-TC v5e/v6e a split is pure overhead.
    # NOTE: with an odd tile count one split carries a clamped phantom tile
    # (masked in-kernel); its cost is one redundant block read.
    ncores = _tensorcores_per_chip()
    nsplit = 2 if (ncores >= 2 and num_tiles >= 2) else 1
    tiles_per_split = pl.cdiv(num_tiles, nsplit)
    needs_mask = (rows % tile_rows != 0) or (nsplit * tiles_per_split != num_tiles)

    def in_index_map(c, i):
        # Clamp so the DMA never starts past the end of the array; phantom
        # tiles are masked to zero inside the kernel.
        return (jnp.minimum(c * tiles_per_split + i, num_tiles - 1), 0)

    kernel = functools.partial(
        _loss_kernel,
        rows=rows,
        tile_rows=tile_rows,
        tiles_per_split=tiles_per_split,
        n_elems=n_elems,
        w_mse=w_mse,
        w_mae=w_mae,
        needs_mask=needs_mask,
    )

    def build(dim_sems):
        return pl.pallas_call(
            kernel,
            out_shape=jax.ShapeDtypeStruct((nsplit, 1), jnp.float32),
            grid_spec=pltpu.PrefetchScalarGridSpec(
                num_scalar_prefetch=0,
                grid=(nsplit, tiles_per_split),
                in_specs=[
                    pl.BlockSpec((tile_rows, LANES), in_index_map),
                    pl.BlockSpec((tile_rows, LANES), in_index_map),
                ],
                out_specs=pl.BlockSpec(
                    (1, 1), lambda c, i: (c, 0), memory_space=pltpu.SMEM
                ),
                scratch_shapes=[
                    pltpu.VMEM((SUBLANES, LANES), jnp.float32),  # sum of d^2
                    pltpu.VMEM((SUBLANES, LANES), jnp.float32),  # sum of |d|
                ],
            ),
            compiler_params=pltpu.CompilerParams(
                dimension_semantics=dim_sems,
                # 2 inputs x 2 buffers x 4 MiB = 16 MiB << 32 MiB; OK on v7x's
                # 64 MiB physical VMEM as well as v5e/v6e's 128 MiB.
                vmem_limit_bytes=32 * 1024 * 1024,
            ),
        )

    if nsplit == 2:
        # True core-level split on v7x; fall back to plain "parallel" if the
        # compiler rejects CORE_PARALLEL for this configuration.
        candidates = [
            (pltpu.CORE_PARALLEL, pltpu.ARBITRARY),
            ("parallel", "arbitrary"),
        ]
    else:
        candidates = [("arbitrary", "arbitrary")]

    out = None
    last_err = None
    for sems in candidates:
        try:
            out = build(sems)(p, t)
            break
        except Exception as e:  # lowering rejection -> try the next semantics
            last_err = e
    if out is None:
        raise last_err

    # Combine the per-split weighted contributions (linear, so order-free).
    return jnp.sum(out)


def _reference(predict, target, list_pond=LIST_POND):
    d = predict.astype(jnp.float32) - target.astype(jnp.float32)
    mse = jnp.mean(d * d)
    mae = jnp.mean(jnp.abs(d))
    return list_pond[0] * mse + list_pond[1] * mae


if __name__ == "__main__":
    key = jax.random.PRNGKey(0)

    def check(shape, dtype, tol):
        nonlocal_key = jax.random.fold_in(key, hash(shape) % (2 ** 31))
        kp, kt = jax.random.split(nonlocal_key)
        predict = jax.random.normal(kp, shape, dtype=jnp.float32).astype(dtype)
        target = jax.random.normal(kt, shape, dtype=jnp.float32).astype(dtype)
        # xla_fallback_elems=0: force the Pallas kernel even at demo sizes.
        loss = custom_loss(predict, target, xla_fallback_elems=0)
        loss = jax.block_until_ready(loss)
        ref = _reference(predict, target)
        assert jnp.allclose(loss, ref, rtol=tol, atol=tol), (shape, dtype, loss, ref)

    # NCHW inputs, small shapes consistent with the module.
    check((2, 4, 16, 16), jnp.float32, 1e-5)    # exact tiling, fast path only
    check((2, 4, 16, 16), jnp.bfloat16, 1e-5)   # bf16 sublane packing (16)
    check((3, 5, 7, 11), jnp.float32, 1e-5)     # lane-unaligned + ragged tile

    print("KERNEL_OK")
</pallas_src>

<mosaic_0001>
module attributes {stable_mosaic.version = 11 : i64} {
  func.func @_loss_kernel(%arg0: i32, %arg1: i32, %arg2: memref<16x128xf32, #tpu.memory_space<vmem>>, %arg3: memref<16x128xf32, #tpu.memory_space<vmem>>, %arg4: memref<1x1xf32, #tpu.memory_space<smem>>, %arg5: memref<8x128xf32, #tpu.memory_space<vmem>>, %arg6: memref<8x128xf32, #tpu.memory_space<vmem>>) attributes {dimension_semantics = [#tpu.dimension_semantics<arbitrary>, #tpu.dimension_semantics<arbitrary>], iteration_bounds = array<i64: 1, 1>, scalar_prefetch = 0 : i64, scratch_operands = 2 : i64, tpu.core_type = #tpu.core_type<tc>, window_params = [{transform_indices = @transform_0, window_bounds = array<i64: 16, 128>}, {transform_indices = @transform_1, window_bounds = array<i64: 16, 128>}, {transform_indices = @transform_2, window_bounds = array<i64: 1, 1>}]} {
    %c0_i32 = arith.constant 0 : i32
    %0 = arith.cmpi eq, %arg1, %c0_i32 : i32
    %1 = arith.extui %0 : i1 to i32
    %c0_i32_0 = arith.constant 0 : i32
    %2 = arith.cmpi ne, %1, %c0_i32_0 : i32
    scf.if %2 {
      %cst_15 = arith.constant 0.000000e+00 : f32
      %21 = vector.broadcast %cst_15 : f32 to vector<8x128xf32>
      %c0_16 = arith.constant 0 : index
      %c0_17 = arith.constant 0 : index
      %22 = vector.load %arg5[%c0_16, %c0_17] : memref<8x128xf32, #tpu.memory_space<vmem>>, vector<8x128xf32>
      tpu.vector_store %arg5[%c0_16, %c0_17], %21 {strides = array<i32>} : memref<8x128xf32, #tpu.memory_space<vmem>>, vector<8x128xf32>,
      %cst_18 = arith.constant 0.000000e+00 : f32
      %23 = vector.broadcast %cst_18 : f32 to vector<8x128xf32>
      %c0_19 = arith.constant 0 : index
      %c0_20 = arith.constant 0 : index
      %24 = vector.load %arg6[%c0_19, %c0_20] : memref<8x128xf32, #tpu.memory_space<vmem>>, vector<8x128xf32>
      tpu.vector_store %arg6[%c0_19, %c0_20], %23 {strides = array<i32>} : memref<8x128xf32, #tpu.memory_space<vmem>>, vector<8x128xf32>,
    } else {
    }
    %c0 = arith.constant 0 : index
    %c0_1 = arith.constant 0 : index
    %3 = vector.load %arg2[%c0, %c0_1] : memref<16x128xf32, #tpu.memory_space<vmem>>, vector<16x128xf32>
    %c0_2 = arith.constant 0 : index
    %c0_3 = arith.constant 0 : index
    %4 = vector.load %arg3[%c0_2, %c0_3] : memref<16x128xf32, #tpu.memory_space<vmem>>, vector<16x128xf32>
    %5 = arith.subf %3, %4 : vector<16x128xf32>
    %c0_4 = arith.constant 0 : index
    %c0_5 = arith.constant 0 : index
    %6 = vector.load %arg5[%c0_4, %c0_5] : memref<8x128xf32, #tpu.memory_space<vmem>>, vector<8x128xf32>
    %7 = arith.mulf %5, %5 : vector<16x128xf32>
    %8 = vector.shape_cast %7 : vector<16x128xf32> to vector<2x8x128xf32>
    %cst = arith.constant dense<0.000000e+00> : vector<8x128xf32>
    %9 = vector.multi_reduction <add>, %8, %cst [0] : vector<2x8x128xf32> to vector<8x128xf32>
    %10 = arith.addf %6, %9 : vector<8x128xf32>
    %c0_6 = arith.constant 0 : index
    %c0_7 = arith.constant 0 : index
    %11 = vector.load %arg5[%c0_6, %c0_7] : memref<8x128xf32, #tpu.memory_space<vmem>>, vector<8x128xf32>
    tpu.vector_store %arg5[%c0_6, %c0_7], %10 {strides = array<i32>} : memref<8x128xf32, #tpu.memory_space<vmem>>, vector<8x128xf32>,
    %c0_8 = arith.constant 0 : index
    %c0_9 = arith.constant 0 : index
    %12 = vector.load %arg6[%c0_8, %c0_9] : memref<8x128xf32, #tpu.memory_space<vmem>>, vector<8x128xf32>
    %13 = math.absf %5 : vector<16x128xf32>
    %14 = vector.shape_cast %13 : vector<16x128xf32> to vector<2x8x128xf32>
    %cst_10 = arith.constant dense<0.000000e+00> : vector<8x128xf32>
    %15 = vector.multi_reduction <add>, %14, %cst_10 [0] : vector<2x8x128xf32> to vector<8x128xf32>
    %16 = arith.addf %12, %15 : vector<8x128xf32>
    %c0_11 = arith.constant 0 : index
    %c0_12 = arith.constant 0 : index
    %17 = vector.load %arg6[%c0_11, %c0_12] : memref<8x128xf32, #tpu.memory_space<vmem>>, vector<8x128xf32>
    tpu.vector_store %arg6[%c0_11, %c0_12], %16 {strides = array<i32>} : memref<8x128xf32, #tpu.memory_space<vmem>>, vector<8x128xf32>,
    %c0_i32_13 = arith.constant 0 : i32
    %18 = arith.cmpi eq, %arg1, %c0_i32_13 : i32
    %19 = arith.extui %18 : i1 to i32
    %c0_i32_14 = arith.constant 0 : i32
    %20 = arith.cmpi ne, %19, %c0_i32_14 : i32
    scf.if %20 {
      %c0_15 = arith.constant 0 : index
      %c0_16 = arith.constant 0 : index
      %21 = vector.load %arg5[%c0_15, %c0_16] : memref<8x128xf32, #tpu.memory_space<vmem>>, vector<8x128xf32>
      %22 = vector.shape_cast %21 : vector<8x128xf32> to vector<1x8x128xf32>
      %cst_17 = arith.constant dense<0.000000e+00> : vector<1xf32>
      %23 = vector.multi_reduction <add>, %22, %cst_17 [1, 2] : vector<1x8x128xf32> to vector<1xf32>
      %24 = vector.shape_cast %23 : vector<1xf32> to vector<1x1x1xf32>
      %25 = vector.extract %24[0, 0, 0] : f32 from vector<1x1x1xf32>
      %cst_18 = arith.constant 4.8828125E-4 : f32
      %26 = arith.mulf %25, %cst_18 : f32
      %c0_19 = arith.constant 0 : index
      %c0_20 = arith.constant 0 : index
      %27 = vector.load %arg6[%c0_19, %c0_20] : memref<8x128xf32, #tpu.memory_space<vmem>>, vector<8x128xf32>
      %28 = vector.shape_cast %27 : vector<8x128xf32> to vector<1x8x128xf32>
      %cst_21 = arith.constant dense<0.000000e+00> : vector<1xf32>
      %29 = vector.multi_reduction <add>, %28, %cst_21 [1, 2] : vector<1x8x128xf32> to vector<1xf32>
      %30 = vector.shape_cast %29 : vector<1xf32> to vector<1x1x1xf32>
      %31 = vector.extract %30[0, 0, 0] : f32 from vector<1x1x1xf32>
      %cst_22 = arith.constant 4.8828125E-4 : f32
      %32 = arith.mulf %31, %cst_22 : f32
      %cst_23 = arith.constant 0.699999988 : f32
      %33 = arith.mulf %cst_23, %26 : f32
      %cst_24 = arith.constant 3.000000e-01 : f32
      %34 = arith.mulf %cst_24, %32 : f32
      %35 = arith.addf %33, %34 : f32
      %c0_25 = arith.constant 0 : index
      %c0_26 = arith.constant 0 : index
      %36 = memref.load %arg4[%c0_25, %c0_26] : memref<1x1xf32, #tpu.memory_space<smem>>
      memref.store %35, %arg4[%c0_25, %c0_26] : memref<1x1xf32, #tpu.memory_space<smem>>
    } else {
    }
    return
  }
  func.func @transform_0(%arg0: i32, %arg1: i32) -> (i32, i32) {
    %c1_i32 = arith.constant 1 : i32
    %0 = arith.muli %arg0, %c1_i32 : i32
    %1 = arith.addi %0, %arg1 : i32
    %c0_i32 = arith.constant 0 : i32
    %2 = arith.minsi %1, %c0_i32 : i32
    %c0_i32_0 = arith.constant 0 : i32
    %c0_i32_1 = arith.constant 0 : i32
    return %2, %c0_i32_0 : i32, i32
  }
  func.func @transform_1(%arg0: i32, %arg1: i32) -> (i32, i32) {
    %c1_i32 = arith.constant 1 : i32
    %0 = arith.muli %arg0, %c1_i32 : i32
    %1 = arith.addi %0, %arg1 : i32
    %c0_i32 = arith.constant 0 : i32
    %2 = arith.minsi %1, %c0_i32 : i32
    %c0_i32_0 = arith.constant 0 : i32
    %c0_i32_1 = arith.constant 0 : i32
    return %2, %c0_i32_0 : i32, i32
  }
  func.func @transform_2(%arg0: i32, %arg1: i32) -> (i32, i32) {
    %c0_i32 = arith.constant 0 : i32
    %c0_i32_0 = arith.constant 0 : i32
    return %arg0, %c0_i32 : i32, i32
  }
}

</mosaic_0001>

<bundles_post_ra>
// kernel: tpu_custom_call.1
= control target key start
LH: loop header
LB: loop body
LE: loop exit
PB: predicated region body
PF: predicated region fallthrough
CT: control target
= control target key end

     0   :  { %7 = vsyncpa [#allocation5], 0  ;;  %s225_s0 = inlined_call_operand.hbm [shape: f32[16,128], index: 0, kind: input, shape index: {}]   ;;  %s226_s1 = inlined_call_operand.hbm [shape: f32[16,128], index: 1, kind: input, shape index: {}]   ;;  %s227_s2 = inlined_call_operand.hbm [shape: f32[1,1], index: 2, kind: output, shape index: {}]  }
   0x1   :  { %8 = vsyncpa [#allocation8], 0 }
   0x2   :  { %9 = vsyncpa [#allocation6], 0  ;;  %s196_s9 = smov [#allocation4]  }
   0x3   :  { %s21_s10 = sshll.u32 %s196_s9, 4  ;;  %s22_s10 = int_to_ptr.vmem [resolvable:$true] %s21_s10 }
   0x4   :  { %s150_s11 = scalar_lea.vmem %s22_s10, 256  ;;  %p155_p1 = scmp.lt.s32.totalorder %s22_s10, %s22_s10 }
   0x5   :  { %p151_p0 = scmp.ne.s32.totalorder %s22_s10, %s150_s11  ;;  %p156_p2 = scmp.lt.s32.totalorder %s150_s11, %s150_s11 }
   0x7   :  { %p157_p3 = por %p156_p2, %p155_p1 }
   0x9   :  { %p158_p4 = pnand %p157_p3, %p151_p0 }
   0xb   :  { %161 = shalt.err (!%p158_p4)
}
   0xc   :  { %s197_s12 = smov 128   ;;  %s198_s13 = smov 8  }
   0xd   :  { %27 = dma.hbm_to_vmem [thread:$0]  %s225_s0, 256, %s22_s10, [#allocation5], %s197_s12, %s197_s12, %s198_s13  }
   0xe   :  { %s199_s16 = smov [#allocation7]  }
   0xf   :  { %s39_s17 = sshll.u32 %s199_s16, 4  ;;  %s40_s17 = int_to_ptr.vmem [resolvable:$true] %s39_s17 }
  0x10   :  { %s170_s18 = scalar_lea.vmem %s40_s17, 256  ;;  %p175_p6 = scmp.lt.s32.totalorder %s40_s17, %s40_s17 }
  0x11   :  { %p171_p5 = scmp.ne.s32.totalorder %s40_s17, %s170_s18  ;;  %p176_p7 = scmp.lt.s32.totalorder %s170_s18, %s170_s18 }
  0x13   :  { %p177_p8 = por %p176_p7, %p175_p6 }
  0x15   :  { %p178_p9 = pnand %p177_p8, %p171_p5 }
  0x17   :  { %181 = shalt.err (!%p178_p9)
}
  0x18   :  { %45 = dma.hbm_to_vmem [thread:$0]  %s226_s1, 256, %s40_s17, [#allocation8], %s197_s12, %s197_s12, %s198_s13  }
  0x19   :  { %190 = dma.done.wait [#allocation5], 256  }
  0x1a   :  { %191 = vsyncadd [#allocation5], 4294967040 }
  0x1b   :  { %192 = dma.done.wait [#allocation8], 256  }
  0x1c   :  { %193 = vsyncadd [#allocation8], 4294967040  ;;  %v66_v0 = vld [vmem:[#allocation4] sm:$0xff]  ;;  %v67_v1 = vld [vmem:[#allocation4 + $0x8] sm:$0xff]  ;;  %s200_s26 = smov [#allocation9]  }
  0x1d   :  { %v68_v2 = vld [vmem:[#allocation7] sm:$0xff]  ;;  %v69_v3 = vld [vmem:[#allocation7 + $0x8] sm:$0xff] }
  0x1e   :  { %v70_v4 = vsub.f32 %v66_v0, %v68_v2  ;;  %v71_v5 = vsub.f32 %v67_v1, %v69_v3 }
  0x20   :  { %v73_v6 = vmul.f32 %v70_v4, %v70_v4  ;;  %v74_v7 = vmul.f32 %v71_v5, %v71_v5  ;;  %v79_v8 = vand.u32 2147483647, %v70_v4  ;;  %v80_v9 = vand.u32 2147483647, %v71_v5 }
  0x22   :  { %v75_v10 = vadd.f32 %v74_v7, %v73_v6  ;;  %v81_v11 = vadd.f32 %v80_v9, %v79_v8 }
  0x24   :  { %88 = vadd.xlane.f32.xlu0 %v75_v10 }
  0x28   :  { %99 = vadd.xlane.f32.xlu0 %v81_v11 }
  0xad   :  { %v89_v12 = vpop.xlane.xlu0 %88 }
  0xae   :  { %v90_v13 = vrot.slane %v89_v12, 4 }
  0xb0   :  { %v91_v14 = vadd.f32 %v90_v13, %v89_v12 }
  0xb1   :  { %v100_v15 = vpop.xlane.xlu0 %99 }
  0xb2   :  { %v92_v16 = vrot.slane %v91_v14, 2  ;;  %v101_v17 = vrot.slane %v100_v15, 4 }
  0xb4   :  { %v102_v18 = vadd.f32 %v101_v17, %v100_v15  ;;  %v93_v19 = vadd.f32 %v92_v16, %v91_v14 }
  0xb6   :  { %v103_v20 = vrot.slane %v102_v18, 2  ;;  %v94_v21 = vrot.slane %v93_v19, 1 }
  0xb8   :  { %v104_v22 = vadd.f32 %v103_v20, %v102_v18  ;;  %v95_v23 = vadd.f32 %v94_v21, %v93_v19 }
  0xba   :  { %133 = vpush %v95_v23  ;;  %v105_v24 = vrot.slane %v104_v22, 1 }
  0xbc   :  { %v106_v25 = vadd.f32 %v105_v24, %v104_v22 }
  0xbe   :  { %135 = vpush %v106_v25 }
  0xeb   :  { %s134_s0 = spop %133 }
  0xec   :  { %s97_s1 = smul.f32 0.00048828125, %s134_s0 }
  0xee   :  { %s109_s23 = smul.f32 0.7, %s97_s1 }
  0xef   :  { %s136_s21 = spop %135 }
  0xf0   :  { %s108_s22 = smul.f32 0.00048828125, %s136_s21 }
  0xf2   :  { %s110_s24 = smul.f32 0.3, %s108_s22 }
  0xf4   :  { %s111_s25 = sadd.f32 %s110_s24, %s109_s23 }
  0xf6   :  { %113 = sst [smem:[#allocation9]] %s111_s25 }
  0xf7   :  { %121 = dma.smem_to_hbm %s200_s26, 16, %s227_s2, [#allocation6]  }
  0xf8   :  { %194 = dma.done.wait [#allocation6], 16  }
  0xf9   :  { %195 = vsyncadd [#allocation6], 4294967280 }
  0xfa   :  { %125 = sfence }
  0xfb   :  { %126 = vsyncpa [#allocation5], 1 }
  0xfc   :  { %127 = vsyncpa [#allocation8], 1 }
  0xfd   :  { %128 = vsyncpa [#allocation6], 1 }

</bundles_post_ra>
